<compile_context>
chip_gen: v6e
topology: v6e:2x2x1
jax: 0.10.0
libtpu: 0.0.40
codegen_flags: <defaults>
</compile_context>

<pallas_src>
import math

import jax
import jax.numpy as jnp
from jax.experimental import pallas as pl
from jax.experimental.pallas import tpu as pltpu

D_MODEL = 32
NHEAD = 4
DIM_FF = 64
HEAD_DIM = D_MODEL // NHEAD
LN_EPS = 1e-5

# Set to jnp.bfloat16 on v6e/v7x for ~2x MXU rate / half the VMEM traffic
# (keep f32 accumulation). Left at f32 so the correctness check stays tight.
MATMUL_DTYPE = jnp.float32


def encoder_layer_kernel(src_ref, w_ref, b_ref, out_ref, attn_ref):
    TB, S, D = src_ref.shape
    R = TB * S
    F = DIM_FF

    x = src_ref[...].astype(jnp.float32).reshape(R, D)        # (R, D) slab

    w = w_ref[...]                                            # (3D+F, 128)
    bias = b_ref[...]                                         # (8, 128)

    # ---- unpack parameter slab (static slices, row offsets are multiples of 8) ----
    wqkv = w[0:D, 0:3 * D].astype(MATMUL_DTYPE)               # (D, 3D)
    wo = w[D:2 * D, 0:D].astype(MATMUL_DTYPE)                 # (D, D)
    w1 = w[2 * D:3 * D, 0:F].astype(MATMUL_DTYPE)             # (D, F)
    w2 = w[3 * D:3 * D + F, 0:D].astype(MATMUL_DTYPE)         # (F, D)

    bqkv = bias[0:1, 0:3 * D]
    bo = bias[1:2, 0:D]
    b1 = bias[2:3, 0:F]
    b2 = bias[3:4, 0:D]
    g1 = bias[4:5, 0:D]
    be1 = bias[5:6, 0:D]
    g2 = bias[6:7, 0:D]
    be2 = bias[7:8, 0:D]

    # ---- fused QKV projection on the folded (R, D) slab (single MXU push) ----
    qkv = jnp.dot(x.astype(MATMUL_DTYPE), wqkv,
                  preferred_element_type=jnp.float32) + bqkv  # (R, 3D)

    # ---- per-head scaled-dot-product attention, batched over TB sequences ----
    scale = 1.0 / math.sqrt(HEAD_DIM)
    attn_acc = jnp.zeros((TB, S, S), jnp.float32)
    ctx_parts = []
    for h in range(NHEAD):                                    # static unroll (NHEAD=4)
        lo = h * HEAD_DIM
        qh = (qkv[:, lo:lo + HEAD_DIM] * scale).reshape(TB, S, HEAD_DIM)
        kh = qkv[:, D + lo:D + lo + HEAD_DIM].reshape(TB, S, HEAD_DIM)
        vh = qkv[:, 2 * D + lo:2 * D + lo + HEAD_DIM].reshape(TB, S, HEAD_DIM)
        # contract last dims directly -> no explicit transpose
        s_h = jnp.einsum('bqd,bkd->bqk', qh, kh,
                         preferred_element_type=jnp.float32)  # (TB, S, S)
        m = jnp.max(s_h, axis=-1, keepdims=True)
        e = jnp.exp(s_h - m)
        inv = pl.reciprocal(jnp.sum(e, axis=-1, keepdims=True), approx=True)
        p = e * inv
        attn_acc = attn_acc + p
        ctx_parts.append(jnp.einsum('bqk,bkd->bqd', p, vh,
                                    preferred_element_type=jnp.float32))
    # averaged attention weights over heads (PyTorch average_attn_weights=True)
    attn_ref[...] = attn_acc * (1.0 / NHEAD)

    ctx = jnp.concatenate(ctx_parts, axis=-1).reshape(R, D)   # (R, D)

    # ---- out projection + residual + LayerNorm1 ----
    ao = jnp.dot(ctx.astype(MATMUL_DTYPE), wo,
                 preferred_element_type=jnp.float32) + bo
    y = x + ao
    mu = jnp.mean(y, axis=-1, keepdims=True)
    yc = y - mu
    var = jnp.mean(yc * yc, axis=-1, keepdims=True)
    y = yc * jax.lax.rsqrt(var + LN_EPS) * g1 + be1

    # ---- feed-forward: linear1 -> ReLU -> linear2 ----
    h1 = jnp.dot(y.astype(MATMUL_DTYPE), w1,
                 preferred_element_type=jnp.float32) + b1
    h1 = jnp.maximum(h1, 0.0)
    h2 = jnp.dot(h1.astype(MATMUL_DTYPE), w2,
                 preferred_element_type=jnp.float32) + b2

    # ---- residual + LayerNorm2 ----
    z = y + h2
    mu2 = jnp.mean(z, axis=-1, keepdims=True)
    zc = z - mu2
    var2 = jnp.mean(zc * zc, axis=-1, keepdims=True)
    z = zc * jax.lax.rsqrt(var2 + LN_EPS) * g2 + be2

    out_ref[...] = z.reshape(TB, S, D).astype(out_ref.dtype)


def _pick_tb(B, S, target_rows=256, max_rows=2048):
    """Batch fold per grid step: smallest divisor of B whose TB*S reaches
    ~target_rows MXU rows (capped by max_rows to bound VMEM)."""
    tb = 1
    for d in range(1, B + 1):
        if B % d != 0 or d * S > max_rows:
            continue
        tb = d
        if d * S >= target_rows:
            break
    return tb


def pack_params(p):
    """Pack 16 parameter tensors into one (3D+F, 128) weight slab + one (8,128)
    bias/gain tile (2 DMA streams instead of 17 tiny padded blocks)."""
    D, F = D_MODEL, DIM_FF
    w_slab = jnp.zeros((3 * D + F, 128), jnp.float32)
    w_slab = w_slab.at[0:D, 0:3 * D].set(
        jnp.concatenate([p["wq"], p["wk"], p["wv"]], axis=1))
    w_slab = w_slab.at[D:2 * D, 0:D].set(p["wo"])
    w_slab = w_slab.at[2 * D:3 * D, 0:F].set(p["w1"])
    w_slab = w_slab.at[3 * D:3 * D + F, 0:D].set(p["w2"])

    b_tile = jnp.zeros((8, 128), jnp.float32)
    b_tile = b_tile.at[0, 0:3 * D].set(
        jnp.concatenate([p["bq"][0], p["bk"][0], p["bv"][0]]))
    b_tile = b_tile.at[1, 0:D].set(p["bo"][0])
    b_tile = b_tile.at[2, 0:F].set(p["b1"][0])
    b_tile = b_tile.at[3, 0:D].set(p["b2"][0])
    b_tile = b_tile.at[4, 0:D].set(p["g1"][0])
    b_tile = b_tile.at[5, 0:D].set(p["be1"][0])
    b_tile = b_tile.at[6, 0:D].set(p["g2"][0])
    b_tile = b_tile.at[7, 0:D].set(p["be2"][0])
    return w_slab, b_tile


def transformer_encoder_layer(src, params):
    """src: (B, S, D_MODEL) float32. Returns (out (B,S,D), attn (B,S,S))."""
    B, S, D = src.shape
    assert D == D_MODEL

    w_slab, b_tile = pack_params(params)
    TB = _pick_tb(B, S)
    grid = (B // TB,)

    in_specs = [
        pl.BlockSpec((TB, S, D), lambda b: (b, 0, 0)),
        pl.BlockSpec(w_slab.shape, lambda b: (0, 0)),   # params resident each step
        pl.BlockSpec(b_tile.shape, lambda b: (0, 0)),
    ]
    out_specs = (pl.BlockSpec((TB, S, D), lambda b: (b, 0, 0)),
                 pl.BlockSpec((TB, S, S), lambda b: (b, 0, 0)))
    out_shape = (jax.ShapeDtypeStruct((B, S, D), jnp.float32),
                 jax.ShapeDtypeStruct((B, S, S), jnp.float32))

    return pl.pallas_call(
        encoder_layer_kernel,
        out_shape=out_shape,
        grid=grid,
        in_specs=in_specs,
        out_specs=out_specs,
        compiler_params=pltpu.CompilerParams(
            # batch axis is embarrassingly parallel -> sharded across the two
            # TensorCores on v7x when the grid length allows it.
            dimension_semantics=("parallel",)),
    )(src, w_slab, b_tile)


def init_params(key):
    """Deterministic synthetic parameters. Projection weights stored pre-transposed
    (y = x @ W + b); biases/gains stored as (1, out_dim)."""
    ks = jax.random.split(key, 12)
    s = 0.1
    return {
        "wq": s * jax.random.normal(ks[0], (D_MODEL, D_MODEL), jnp.float32),
        "wk": s * jax.random.normal(ks[1], (D_MODEL, D_MODEL), jnp.float32),
        "wv": s * jax.random.normal(ks[2], (D_MODEL, D_MODEL), jnp.float32),
        "bq": s * jax.random.normal(ks[3], (1, D_MODEL), jnp.float32),
        "bk": s * jax.random.normal(ks[4], (1, D_MODEL), jnp.float32),
        "bv": s * jax.random.normal(ks[5], (1, D_MODEL), jnp.float32),
        "wo": s * jax.random.normal(ks[6], (D_MODEL, D_MODEL), jnp.float32),
        "bo": s * jax.random.normal(ks[7], (1, D_MODEL), jnp.float32),
        "g1": jnp.ones((1, D_MODEL), jnp.float32),
        "be1": jnp.zeros((1, D_MODEL), jnp.float32),
        "w1": s * jax.random.normal(ks[8], (D_MODEL, DIM_FF), jnp.float32),
        "b1": s * jax.random.normal(ks[9], (1, DIM_FF), jnp.float32),
        "w2": s * jax.random.normal(ks[10], (DIM_FF, D_MODEL), jnp.float32),
        "b2": s * jax.random.normal(ks[11], (1, D_MODEL), jnp.float32),
        "g2": jnp.ones((1, D_MODEL), jnp.float32),
        "be2": jnp.zeros((1, D_MODEL), jnp.float32),
    }


def reference(src, p):
    """Pure-JAX reference mirroring PyTorch TransformerEncoderLayer (eval mode)."""
    B, S, D = src.shape
    q = src @ p["wq"] + p["bq"][0]
    k = src @ p["wk"] + p["bk"][0]
    v = src @ p["wv"] + p["bv"][0]
    qh = q.reshape(B, S, NHEAD, HEAD_DIM).transpose(0, 2, 1, 3)
    kh = k.reshape(B, S, NHEAD, HEAD_DIM).transpose(0, 2, 1, 3)
    vh = v.reshape(B, S, NHEAD, HEAD_DIM).transpose(0, 2, 1, 3)
    scores = jnp.einsum("bhqd,bhkd->bhqk", qh, kh) / math.sqrt(HEAD_DIM)
    probs = jax.nn.softmax(scores, axis=-1)
    attn = probs.mean(axis=1)
    ctx = jnp.einsum("bhqk,bhkd->bhqd", probs, vh).transpose(0, 2, 1, 3).reshape(B, S, D)
    attn_out = ctx @ p["wo"] + p["bo"][0]

    def ln(x, g, b):
        mu = x.mean(-1, keepdims=True)
        var = ((x - mu) ** 2).mean(-1, keepdims=True)
        return (x - mu) * jax.lax.rsqrt(var + LN_EPS) * g[0] + b[0]

    y = ln(src + attn_out, p["g1"], p["be1"])
    h = jnp.maximum(y @ p["w1"] + p["b1"][0], 0.0)
    z = ln(y + (h @ p["w2"] + p["b2"][0]), p["g2"], p["be2"])
    return z, attn


if __name__ == "__main__":
    key = jax.random.PRNGKey(0)
    k_x, k_p = jax.random.split(key)

    B, S = 2, 8
    src = jax.random.normal(k_x, (B, S, D_MODEL), jnp.float32)
    params = init_params(k_p)

    out, attn = transformer_encoder_layer(src, params)
    out = jax.block_until_ready(out)
    attn = jax.block_until_ready(attn)

    ref_out, ref_attn = reference(src, params)
    # tolerances allow for the EUP approximate reciprocal in the softmax
    assert jnp.allclose(out, ref_out, atol=2e-3, rtol=2e-3), "output mismatch"
    assert jnp.allclose(attn, ref_attn, atol=2e-3, rtol=2e-3), "attn mismatch"

    print("KERNEL_OK")
</pallas_src>

<mosaic_0001>
module attributes {stable_mosaic.version = 11 : i64} {
  func.func @encoder_layer_kernel(%arg0: i32, %arg1: memref<2x8x32xf32, #tpu.memory_space<vmem>>, %arg2: memref<160x128xf32, #tpu.memory_space<vmem>>, %arg3: memref<8x128xf32, #tpu.memory_space<vmem>>, %arg4: memref<2x8x32xf32, #tpu.memory_space<vmem>>, %arg5: memref<2x8x8xf32, #tpu.memory_space<vmem>>) attributes {dimension_semantics = [#tpu.dimension_semantics<parallel>], iteration_bounds = array<i64: 1>, scalar_prefetch = 0 : i64, scratch_operands = 0 : i64, tpu.core_type = #tpu.core_type<tc>, window_params = [{transform_indices = @transform_0, window_bounds = array<i64: 2, 8, 32>}, {pipeline_mode = #tpu.pipeline_mode<synchronous>, transform_indices = @transform_1, window_bounds = array<i64: 160, 128>}, {pipeline_mode = #tpu.pipeline_mode<synchronous>, transform_indices = @transform_2, window_bounds = array<i64: 8, 128>}, {transform_indices = @transform_3, window_bounds = array<i64: 2, 8, 32>}, {transform_indices = @transform_4, window_bounds = array<i64: 2, 8, 8>}]} {
    %c0 = arith.constant 0 : index
    %c0_0 = arith.constant 0 : index
    %c0_1 = arith.constant 0 : index
    %0 = vector.load %arg1[%c0, %c0_0, %c0_1] : memref<2x8x32xf32, #tpu.memory_space<vmem>>, vector<2x8x32xf32>
    %1 = vector.shape_cast %0 : vector<2x8x32xf32> to vector<16x32xf32>
    %c0_2 = arith.constant 0 : index
    %c0_3 = arith.constant 0 : index
    %2 = vector.load %arg2[%c0_2, %c0_3] : memref<160x128xf32, #tpu.memory_space<vmem>>, vector<160x128xf32>
    %c0_4 = arith.constant 0 : index
    %c0_5 = arith.constant 0 : index
    %3 = vector.load %arg3[%c0_4, %c0_5] : memref<8x128xf32, #tpu.memory_space<vmem>>, vector<8x128xf32>
    %4 = vector.extract_strided_slice %2 {offsets = [0, 0], sizes = [32, 96], strides = [1, 1]} : vector<160x128xf32> to vector<32x96xf32>
    %5 = vector.extract_strided_slice %2 {offsets = [32, 0], sizes = [32, 32], strides = [1, 1]} : vector<160x128xf32> to vector<32x32xf32>
    %6 = vector.extract_strided_slice %2 {offsets = [64, 0], sizes = [32, 64], strides = [1, 1]} : vector<160x128xf32> to vector<32x64xf32>
    %7 = vector.extract_strided_slice %2 {offsets = [96, 0], sizes = [64, 32], strides = [1, 1]} : vector<160x128xf32> to vector<64x32xf32>
    %8 = vector.extract_strided_slice %3 {offsets = [0, 0], sizes = [1, 96], strides = [1, 1]} : vector<8x128xf32> to vector<1x96xf32>
    %9 = vector.extract_strided_slice %3 {offsets = [1, 0], sizes = [1, 32], strides = [1, 1]} : vector<8x128xf32> to vector<1x32xf32>
    %10 = vector.extract_strided_slice %3 {offsets = [2, 0], sizes = [1, 64], strides = [1, 1]} : vector<8x128xf32> to vector<1x64xf32>
    %11 = vector.extract_strided_slice %3 {offsets = [3, 0], sizes = [1, 32], strides = [1, 1]} : vector<8x128xf32> to vector<1x32xf32>
    %12 = vector.extract_strided_slice %3 {offsets = [4, 0], sizes = [1, 32], strides = [1, 1]} : vector<8x128xf32> to vector<1x32xf32>
    %13 = vector.extract_strided_slice %3 {offsets = [5, 0], sizes = [1, 32], strides = [1, 1]} : vector<8x128xf32> to vector<1x32xf32>
    %14 = vector.extract_strided_slice %3 {offsets = [6, 0], sizes = [1, 32], strides = [1, 1]} : vector<8x128xf32> to vector<1x32xf32>
    %15 = vector.extract_strided_slice %3 {offsets = [7, 0], sizes = [1, 32], strides = [1, 1]} : vector<8x128xf32> to vector<1x32xf32>
    %cst = arith.constant dense<0.000000e+00> : vector<16x96xf32>
    %16 = tpu.matmul %1, %4, %cst {dimension_numbers = #tpu.dot_dimension_numbers<[1], [0], [0], [1], [0, 0, 1, 1], [], []>} : vector<16x32xf32>, vector<32x96xf32>, vector<16x96xf32> -> vector<16x96xf32>
    %17 = vector.broadcast %8 : vector<1x96xf32> to vector<16x96xf32>
    %18 = arith.addf %16, %17 : vector<16x96xf32>
    %cst_6 = arith.constant 0.000000e+00 : f32
    %19 = vector.broadcast %cst_6 : f32 to vector<2x8x8xf32>
    %20 = vector.extract_strided_slice %18 {offsets = [0, 0], sizes = [16, 8], strides = [1, 1]} : vector<16x96xf32> to vector<16x8xf32>
    %cst_7 = arith.constant 0.353553385 : f32
    %21 = vector.broadcast %cst_7 : f32 to vector<16x8xf32>
    %22 = arith.mulf %20, %21 : vector<16x8xf32>
    %23 = vector.shape_cast %22 : vector<16x8xf32> to vector<2x8x8xf32>
    %24 = vector.extract_strided_slice %18 {offsets = [0, 32], sizes = [16, 8], strides = [1, 1]} : vector<16x96xf32> to vector<16x8xf32>
    %25 = vector.shape_cast %24 : vector<16x8xf32> to vector<2x8x8xf32>
    %26 = vector.extract_strided_slice %18 {offsets = [0, 64], sizes = [16, 8], strides = [1, 1]} : vector<16x96xf32> to vector<16x8xf32>
    %27 = vector.shape_cast %26 : vector<16x8xf32> to vector<2x8x8xf32>
    "tpu.trace_start"() <{level = 10 : i32, message = "bqd,bkd->bqk"}> : () -> ()
    %cst_8 = arith.constant dense<0.000000e+00> : vector<2x8x8xf32>
    %28 = tpu.matmul %23, %25, %cst_8 {dimension_numbers = #tpu.dot_dimension_numbers<[2], [2], [1], [1], [0, 0, 0, 1, 1, 1], [0], [0]>} : vector<2x8x8xf32>, vector<2x8x8xf32>, vector<2x8x8xf32> -> vector<2x8x8xf32>
    "tpu.trace_stop"() : () -> ()
    %cst_9 = arith.constant dense<0xFF800000> : vector<2x8xf32>
    %29 = vector.multi_reduction <maximumf>, %28, %cst_9 [2] : vector<2x8x8xf32> to vector<2x8xf32>
    %30 = vector.shape_cast %29 : vector<2x8xf32> to vector<2x8x1xf32>
    %31 = vector.broadcast %30 : vector<2x8x1xf32> to vector<2x8x8xf32>
    %32 = arith.subf %28, %31 : vector<2x8x8xf32>
    %33 = math.exp %32 : vector<2x8x8xf32>
    %cst_10 = arith.constant dense<0.000000e+00> : vector<2x8xf32>
    %34 = vector.multi_reduction <add>, %33, %cst_10 [2] : vector<2x8x8xf32> to vector<2x8xf32>
    %35 = vector.shape_cast %34 : vector<2x8xf32> to vector<2x8x1xf32>
    %36 = tpu.reciprocal %35 {approx = true} : vector<2x8x1xf32> -> vector<2x8x1xf32>
    %37 = vector.broadcast %36 : vector<2x8x1xf32> to vector<2x8x8xf32>
    %38 = arith.mulf %33, %37 : vector<2x8x8xf32>
    %39 = arith.addf %19, %38 : vector<2x8x8xf32>
    "tpu.trace_start"() <{level = 10 : i32, message = "bqk,bkd->bqd"}> : () -> ()
    %cst_11 = arith.constant dense<0.000000e+00> : vector<2x8x8xf32>
    %40 = tpu.matmul %38, %27, %cst_11 {dimension_numbers = #tpu.dot_dimension_numbers<[2], [1], [1], [2], [0, 0, 0, 1, 1, 2], [0], [0]>} : vector<2x8x8xf32>, vector<2x8x8xf32>, vector<2x8x8xf32> -> vector<2x8x8xf32>
    "tpu.trace_stop"() : () -> ()
    %41 = vector.extract_strided_slice %18 {offsets = [0, 8], sizes = [16, 8], strides = [1, 1]} : vector<16x96xf32> to vector<16x8xf32>
    %cst_12 = arith.constant 0.353553385 : f32
    %42 = vector.broadcast %cst_12 : f32 to vector<16x8xf32>
    %43 = arith.mulf %41, %42 : vector<16x8xf32>
    %44 = vector.shape_cast %43 : vector<16x8xf32> to vector<2x8x8xf32>
    %45 = vector.extract_strided_slice %18 {offsets = [0, 40], sizes = [16, 8], strides = [1, 1]} : vector<16x96xf32> to vector<16x8xf32>
    %46 = vector.shape_cast %45 : vector<16x8xf32> to vector<2x8x8xf32>
    %47 = vector.extract_strided_slice %18 {offsets = [0, 72], sizes = [16, 8], strides = [1, 1]} : vector<16x96xf32> to vector<16x8xf32>
    %48 = vector.shape_cast %47 : vector<16x8xf32> to vector<2x8x8xf32>
    "tpu.trace_start"() <{level = 10 : i32, message = "bqd,bkd->bqk"}> : () -> ()
    %cst_13 = arith.constant dense<0.000000e+00> : vector<2x8x8xf32>
    %49 = tpu.matmul %44, %46, %cst_13 {dimension_numbers = #tpu.dot_dimension_numbers<[2], [2], [1], [1], [0, 0, 0, 1, 1, 1], [0], [0]>} : vector<2x8x8xf32>, vector<2x8x8xf32>, vector<2x8x8xf32> -> vector<2x8x8xf32>
    "tpu.trace_stop"() : () -> ()
    %cst_14 = arith.constant dense<0xFF800000> : vector<2x8xf32>
    %50 = vector.multi_reduction <maximumf>, %49, %cst_14 [2] : vector<2x8x8xf32> to vector<2x8xf32>
    %51 = vector.shape_cast %50 : vector<2x8xf32> to vector<2x8x1xf32>
    %52 = vector.broadcast %51 : vector<2x8x1xf32> to vector<2x8x8xf32>
    %53 = arith.subf %49, %52 : vector<2x8x8xf32>
    %54 = math.exp %53 : vector<2x8x8xf32>
    %cst_15 = arith.constant dense<0.000000e+00> : vector<2x8xf32>
    %55 = vector.multi_reduction <add>, %54, %cst_15 [2] : vector<2x8x8xf32> to vector<2x8xf32>
    %56 = vector.shape_cast %55 : vector<2x8xf32> to vector<2x8x1xf32>
    %57 = tpu.reciprocal %56 {approx = true} : vector<2x8x1xf32> -> vector<2x8x1xf32>
    %58 = vector.broadcast %57 : vector<2x8x1xf32> to vector<2x8x8xf32>
    %59 = arith.mulf %54, %58 : vector<2x8x8xf32>
    %60 = arith.addf %39, %59 : vector<2x8x8xf32>
    "tpu.trace_start"() <{level = 10 : i32, message = "bqk,bkd->bqd"}> : () -> ()
    %cst_16 = arith.constant dense<0.000000e+00> : vector<2x8x8xf32>
    %61 = tpu.matmul %59, %48, %cst_16 {dimension_numbers = #tpu.dot_dimension_numbers<[2], [1], [1], [2], [0, 0, 0, 1, 1, 2], [0], [0]>} : vector<2x8x8xf32>, vector<2x8x8xf32>, vector<2x8x8xf32> -> vector<2x8x8xf32>
    "tpu.trace_stop"() : () -> ()
    %62 = vector.extract_strided_slice %18 {offsets = [0, 16], sizes = [16, 8], strides = [1, 1]} : vector<16x96xf32> to vector<16x8xf32>
    %cst_17 = arith.constant 0.353553385 : f32
    %63 = vector.broadcast %cst_17 : f32 to vector<16x8xf32>
    %64 = arith.mulf %62, %63 : vector<16x8xf32>
    %65 = vector.shape_cast %64 : vector<16x8xf32> to vector<2x8x8xf32>
    %66 = vector.extract_strided_slice %18 {offsets = [0, 48], sizes = [16, 8], strides = [1, 1]} : vector<16x96xf32> to vector<16x8xf32>
    %67 = vector.shape_cast %66 : vector<16x8xf32> to vector<2x8x8xf32>
    %68 = vector.extract_strided_slice %18 {offsets = [0, 80], sizes = [16, 8], strides = [1, 1]} : vector<16x96xf32> to vector<16x8xf32>
    %69 = vector.shape_cast %68 : vector<16x8xf32> to vector<2x8x8xf32>
    "tpu.trace_start"() <{level = 10 : i32, message = "bqd,bkd->bqk"}> : () -> ()
    %cst_18 = arith.constant dense<0.000000e+00> : vector<2x8x8xf32>
    %70 = tpu.matmul %65, %67, %cst_18 {dimension_numbers = #tpu.dot_dimension_numbers<[2], [2], [1], [1], [0, 0, 0, 1, 1, 1], [0], [0]>} : vector<2x8x8xf32>, vector<2x8x8xf32>, vector<2x8x8xf32> -> vector<2x8x8xf32>
    "tpu.trace_stop"() : () -> ()
    %cst_19 = arith.constant dense<0xFF800000> : vector<2x8xf32>
    %71 = vector.multi_reduction <maximumf>, %70, %cst_19 [2] : vector<2x8x8xf32> to vector<2x8xf32>
    %72 = vector.shape_cast %71 : vector<2x8xf32> to vector<2x8x1xf32>
    %73 = vector.broadcast %72 : vector<2x8x1xf32> to vector<2x8x8xf32>
    %74 = arith.subf %70, %73 : vector<2x8x8xf32>
    %75 = math.exp %74 : vector<2x8x8xf32>
    %cst_20 = arith.constant dense<0.000000e+00> : vector<2x8xf32>
    %76 = vector.multi_reduction <add>, %75, %cst_20 [2] : vector<2x8x8xf32> to vector<2x8xf32>
    %77 = vector.shape_cast %76 : vector<2x8xf32> to vector<2x8x1xf32>
    %78 = tpu.reciprocal %77 {approx = true} : vector<2x8x1xf32> -> vector<2x8x1xf32>
    %79 = vector.broadcast %78 : vector<2x8x1xf32> to vector<2x8x8xf32>
    %80 = arith.mulf %75, %79 : vector<2x8x8xf32>
    %81 = arith.addf %60, %80 : vector<2x8x8xf32>
    "tpu.trace_start"() <{level = 10 : i32, message = "bqk,bkd->bqd"}> : () -> ()
    %cst_21 = arith.constant dense<0.000000e+00> : vector<2x8x8xf32>
    %82 = tpu.matmul %80, %69, %cst_21 {dimension_numbers = #tpu.dot_dimension_numbers<[2], [1], [1], [2], [0, 0, 0, 1, 1, 2], [0], [0]>} : vector<2x8x8xf32>, vector<2x8x8xf32>, vector<2x8x8xf32> -> vector<2x8x8xf32>
    "tpu.trace_stop"() : () -> ()
    %83 = vector.extract_strided_slice %18 {offsets = [0, 24], sizes = [16, 8], strides = [1, 1]} : vector<16x96xf32> to vector<16x8xf32>
    %cst_22 = arith.constant 0.353553385 : f32
    %84 = vector.broadcast %cst_22 : f32 to vector<16x8xf32>
    %85 = arith.mulf %83, %84 : vector<16x8xf32>
    %86 = vector.shape_cast %85 : vector<16x8xf32> to vector<2x8x8xf32>
    %87 = vector.extract_strided_slice %18 {offsets = [0, 56], sizes = [16, 8], strides = [1, 1]} : vector<16x96xf32> to vector<16x8xf32>
    %88 = vector.shape_cast %87 : vector<16x8xf32> to vector<2x8x8xf32>
    %89 = vector.extract_strided_slice %18 {offsets = [0, 88], sizes = [16, 8], strides = [1, 1]} : vector<16x96xf32> to vector<16x8xf32>
    %90 = vector.shape_cast %89 : vector<16x8xf32> to vector<2x8x8xf32>
    "tpu.trace_start"() <{level = 10 : i32, message = "bqd,bkd->bqk"}> : () -> ()
    %cst_23 = arith.constant dense<0.000000e+00> : vector<2x8x8xf32>
    %91 = tpu.matmul %86, %88, %cst_23 {dimension_numbers = #tpu.dot_dimension_numbers<[2], [2], [1], [1], [0, 0, 0, 1, 1, 1], [0], [0]>} : vector<2x8x8xf32>, vector<2x8x8xf32>, vector<2x8x8xf32> -> vector<2x8x8xf32>
    "tpu.trace_stop"() : () -> ()
    %cst_24 = arith.constant dense<0xFF800000> : vector<2x8xf32>
    %92 = vector.multi_reduction <maximumf>, %91, %cst_24 [2] : vector<2x8x8xf32> to vector<2x8xf32>
    %93 = vector.shape_cast %92 : vector<2x8xf32> to vector<2x8x1xf32>
    %94 = vector.broadcast %93 : vector<2x8x1xf32> to vector<2x8x8xf32>
    %95 = arith.subf %91, %94 : vector<2x8x8xf32>
    %96 = math.exp %95 : vector<2x8x8xf32>
    %cst_25 = arith.constant dense<0.000000e+00> : vector<2x8xf32>
    %97 = vector.multi_reduction <add>, %96, %cst_25 [2] : vector<2x8x8xf32> to vector<2x8xf32>
    %98 = vector.shape_cast %97 : vector<2x8xf32> to vector<2x8x1xf32>
    %99 = tpu.reciprocal %98 {approx = true} : vector<2x8x1xf32> -> vector<2x8x1xf32>
    %100 = vector.broadcast %99 : vector<2x8x1xf32> to vector<2x8x8xf32>
    %101 = arith.mulf %96, %100 : vector<2x8x8xf32>
    %102 = arith.addf %81, %101 : vector<2x8x8xf32>
    "tpu.trace_start"() <{level = 10 : i32, message = "bqk,bkd->bqd"}> : () -> ()
    %cst_26 = arith.constant dense<0.000000e+00> : vector<2x8x8xf32>
    %103 = tpu.matmul %101, %90, %cst_26 {dimension_numbers = #tpu.dot_dimension_numbers<[2], [1], [1], [2], [0, 0, 0, 1, 1, 2], [0], [0]>} : vector<2x8x8xf32>, vector<2x8x8xf32>, vector<2x8x8xf32> -> vector<2x8x8xf32>
    "tpu.trace_stop"() : () -> ()
    %cst_27 = arith.constant 2.500000e-01 : f32
    %104 = vector.broadcast %cst_27 : f32 to vector<2x8x8xf32>
    %105 = arith.mulf %102, %104 : vector<2x8x8xf32>
    %c0_28 = arith.constant 0 : index
    %c0_29 = arith.constant 0 : index
    %c0_30 = arith.constant 0 : index
    %106 = vector.load %arg5[%c0_28, %c0_29, %c0_30] : memref<2x8x8xf32, #tpu.memory_space<vmem>>, vector<2x8x8xf32>
    tpu.vector_store %arg5[%c0_28, %c0_29, %c0_30], %105 {strides = array<i32>} : memref<2x8x8xf32, #tpu.memory_space<vmem>>, vector<2x8x8xf32>,
    %107 = tpu.concatenate %40, %61, %82, %103 in 2 : vector<2x8x8xf32>, vector<2x8x8xf32>, vector<2x8x8xf32>, vector<2x8x8xf32> -> vector<2x8x32xf32>
    %108 = vector.shape_cast %107 : vector<2x8x32xf32> to vector<16x32xf32>
    %cst_31 = arith.constant dense<0.000000e+00> : vector<16x32xf32>
    %109 = tpu.matmul %108, %5, %cst_31 {dimension_numbers = #tpu.dot_dimension_numbers<[1], [0], [0], [1], [0, 0, 1, 1], [], []>} : vector<16x32xf32>, vector<32x32xf32>, vector<16x32xf32> -> vector<16x32xf32>
    %110 = vector.broadcast %9 : vector<1x32xf32> to vector<16x32xf32>
    %111 = arith.addf %109, %110 : vector<16x32xf32>
    %112 = arith.addf %1, %111 : vector<16x32xf32>
    %cst_32 = arith.constant dense<0.000000e+00> : vector<16xf32>
    %113 = vector.multi_reduction <add>, %112, %cst_32 [1] : vector<16x32xf32> to vector<16xf32>
    %114 = vector.shape_cast %113 : vector<16xf32> to vector<16x1xf32>
    %cst_33 = arith.constant 3.200000e+01 : f32
    %115 = vector.broadcast %cst_33 : f32 to vector<16x1xf32>
    %116 = arith.divf %114, %115 : vector<16x1xf32>
    %117 = vector.broadcast %116 : vector<16x1xf32> to vector<16x32xf32>
    %118 = arith.subf %112, %117 : vector<16x32xf32>
    %119 = arith.mulf %118, %118 : vector<16x32xf32>
    %cst_34 = arith.constant dense<0.000000e+00> : vector<16xf32>
    %120 = vector.multi_reduction <add>, %119, %cst_34 [1] : vector<16x32xf32> to vector<16xf32>
    %121 = vector.shape_cast %120 : vector<16xf32> to vector<16x1xf32>
    %cst_35 = arith.constant 3.200000e+01 : f32
    %122 = vector.broadcast %cst_35 : f32 to vector<16x1xf32>
    %123 = arith.divf %121, %122 : vector<16x1xf32>
    %cst_36 = arith.constant 9.99999974E-6 : f32
    %124 = vector.broadcast %cst_36 : f32 to vector<16x1xf32>
    %125 = arith.addf %123, %124 : vector<16x1xf32>
    %126 = math.rsqrt %125 : vector<16x1xf32>
    %127 = vector.broadcast %126 : vector<16x1xf32> to vector<16x32xf32>
    %128 = arith.mulf %118, %127 : vector<16x32xf32>
    %129 = vector.broadcast %12 : vector<1x32xf32> to vector<16x32xf32>
    %130 = arith.mulf %128, %129 : vector<16x32xf32>
    %131 = vector.broadcast %13 : vector<1x32xf32> to vector<16x32xf32>
    %132 = arith.addf %130, %131 : vector<16x32xf32>
    %cst_37 = arith.constant dense<0.000000e+00> : vector<16x64xf32>
    %133 = tpu.matmul %132, %6, %cst_37 {dimension_numbers = #tpu.dot_dimension_numbers<[1], [0], [0], [1], [0, 0, 1, 1], [], []>} : vector<16x32xf32>, vector<32x64xf32>, vector<16x64xf32> -> vector<16x64xf32>
    %134 = vector.broadcast %10 : vector<1x64xf32> to vector<16x64xf32>
    %135 = arith.addf %133, %134 : vector<16x64xf32>
    %cst_38 = arith.constant 0.000000e+00 : f32
    %136 = vector.broadcast %cst_38 : f32 to vector<16x64xf32>
    %137 = arith.maximumf %135, %136 : vector<16x64xf32>
    %cst_39 = arith.constant dense<0.000000e+00> : vector<16x32xf32>
    %138 = tpu.matmul %137, %7, %cst_39 {dimension_numbers = #tpu.dot_dimension_numbers<[1], [0], [0], [1], [0, 0, 1, 1], [], []>} : vector<16x64xf32>, vector<64x32xf32>, vector<16x32xf32> -> vector<16x32xf32>
    %139 = vector.broadcast %11 : vector<1x32xf32> to vector<16x32xf32>
    %140 = arith.addf %138, %139 : vector<16x32xf32>
    %141 = arith.addf %132, %140 : vector<16x32xf32>
    %cst_40 = arith.constant dense<0.000000e+00> : vector<16xf32>
    %142 = vector.multi_reduction <add>, %141, %cst_40 [1] : vector<16x32xf32> to vector<16xf32>
    %143 = vector.shape_cast %142 : vector<16xf32> to vector<16x1xf32>
    %cst_41 = arith.constant 3.200000e+01 : f32
    %144 = vector.broadcast %cst_41 : f32 to vector<16x1xf32>
    %145 = arith.divf %143, %144 : vector<16x1xf32>
    %146 = vector.broadcast %145 : vector<16x1xf32> to vector<16x32xf32>
    %147 = arith.subf %141, %146 : vector<16x32xf32>
    %148 = arith.mulf %147, %147 : vector<16x32xf32>
    %cst_42 = arith.constant dense<0.000000e+00> : vector<16xf32>
    %149 = vector.multi_reduction <add>, %148, %cst_42 [1] : vector<16x32xf32> to vector<16xf32>
    %150 = vector.shape_cast %149 : vector<16xf32> to vector<16x1xf32>
    %cst_43 = arith.constant 3.200000e+01 : f32
    %151 = vector.broadcast %cst_43 : f32 to vector<16x1xf32>
    %152 = arith.divf %150, %151 : vector<16x1xf32>
    %cst_44 = arith.constant 9.99999974E-6 : f32
    %153 = vector.broadcast %cst_44 : f32 to vector<16x1xf32>
    %154 = arith.addf %152, %153 : vector<16x1xf32>
    %155 = math.rsqrt %154 : vector<16x1xf32>
    %156 = vector.broadcast %155 : vector<16x1xf32> to vector<16x32xf32>
    %157 = arith.mulf %147, %156 : vector<16x32xf32>
    %158 = vector.broadcast %14 : vector<1x32xf32> to vector<16x32xf32>
    %159 = arith.mulf %157, %158 : vector<16x32xf32>
    %160 = vector.broadcast %15 : vector<1x32xf32> to vector<16x32xf32>
    %161 = arith.addf %159, %160 : vector<16x32xf32>
    %162 = vector.shape_cast %161 : vector<16x32xf32> to vector<2x8x32xf32>
    %c0_45 = arith.constant 0 : index
    %c0_46 = arith.constant 0 : index
    %c0_47 = arith.constant 0 : index
    %163 = vector.load %arg4[%c0_45, %c0_46, %c0_47] : memref<2x8x32xf32, #tpu.memory_space<vmem>>, vector<2x8x32xf32>
    tpu.vector_store %arg4[%c0_45, %c0_46, %c0_47], %162 {strides = array<i32>} : memref<2x8x32xf32, #tpu.memory_space<vmem>>, vector<2x8x32xf32>,
    return
  }
  func.func @transform_0(%arg0: i32) -> (i32, i32, i32) {
    %c0_i32 = arith.constant 0 : i32
    %c0_i32_0 = arith.constant 0 : i32
    %c0_i32_1 = arith.constant 0 : i32
    return %arg0, %c0_i32, %c0_i32_0 : i32, i32, i32
  }
  func.func @transform_1(%arg0: i32) -> (i32, i32) {
    %c0_i32 = arith.constant 0 : i32
    %c0_i32_0 = arith.constant 0 : i32
    %c0_i32_1 = arith.constant 0 : i32
    return %c0_i32, %c0_i32_0 : i32, i32
  }
  func.func @transform_2(%arg0: i32) -> (i32, i32) {
    %c0_i32 = arith.constant 0 : i32
    %c0_i32_0 = arith.constant 0 : i32
    %c0_i32_1 = arith.constant 0 : i32
    return %c0_i32, %c0_i32_0 : i32, i32
  }
  func.func @transform_3(%arg0: i32) -> (i32, i32, i32) {
    %c0_i32 = arith.constant 0 : i32
    %c0_i32_0 = arith.constant 0 : i32
    %c0_i32_1 = arith.constant 0 : i32
    return %arg0, %c0_i32, %c0_i32_0 : i32, i32, i32
  }
  func.func @transform_4(%arg0: i32) -> (i32, i32, i32) {
    %c0_i32 = arith.constant 0 : i32
    %c0_i32_0 = arith.constant 0 : i32
    %c0_i32_1 = arith.constant 0 : i32
    return %arg0, %c0_i32, %c0_i32_0 : i32, i32, i32
  }
}

</mosaic_0001>

<bundles_post_ra>
// kernel: tpu_custom_call.1
= control target key start
LH: loop header
LB: loop body
LE: loop exit
PB: predicated region body
PF: predicated region fallthrough
CT: control target
= control target key end

     0   :  { %10 = vsyncpa [#allocation3], 0  ;;  %s2579_s0 = inlined_call_operand.hbm [shape: f32[2,8,32], index: 0, kind: input, shape index: {}]   ;;  %s2580_s1 = inlined_call_operand.hbm [shape: f32[160,128], index: 1, kind: input, shape index: {}]   ;;  %s2581_s2 = inlined_call_operand.hbm [shape: f32[8,128], index: 2, kind: input, shape index: {}]   ;;  %s2582_s3 = inlined_call_operand.hbm [shape: f32[2,8,32], index: 3, kind: output, shape index: {0}]   ;;  %s2583_s4 = inlined_call_operand.hbm [shape: f32[2,8,8], index: 4, kind: output, shape index: {1}]  }
   0x1   :  { %11 = vsyncpa [#allocation6], 0 }
   0x2   :  { %12 = vsyncpa [#allocation4], 0 }
   0x3   :  { %13 = vsyncpa [#allocation10], 0  ;;  %s2302_s15 = smov [#allocation5]   ;;  %s2303_s17 = smov [#allocation2]  }
   0x4   :  { %s31_s16 = sshll.u32 %s2302_s15, 4  ;;  %s19_s18 = sshll.u32 %s2303_s17, 4  ;;  %s32_s16 = int_to_ptr.vmem [resolvable:$true] %s31_s16  ;;  %s20_s18 = int_to_ptr.vmem [resolvable:$true] %s19_s18 }
   0x5   :  { %s2202_s19 = scalar_lea.vmem %s32_s16, 2560  ;;  %p2207_p1 = scmp.lt.s32.totalorder %s32_s16, %s32_s16 }
   0x6   :  { %p2203_p0 = scmp.ne.s32.totalorder %s32_s16, %s2202_s19  ;;  %p2208_p2 = scmp.lt.s32.totalorder %s2202_s19, %s2202_s19 }
   0x8   :  { %p2209_p3 = por %p2208_p2, %p2207_p1 }
   0xa   :  { %p2210_p4 = pnand %p2209_p3, %p2203_p0 }
   0xc   :  { %2213 = shalt.err (!%p2210_p4)
}
   0xd   :  { %s2304_s20 = smov 128   ;;  %s2305_s21 = smov 8  }
   0xe   :  { %37 = dma.hbm_to_vmem [thread:$0]  %s2580_s1, 2560, %s32_s16, [#allocation6], %s2304_s20, %s2304_s20, %s2305_s21  }
   0xf   :  { %s2222_s24 = scalar_lea.vmem %s20_s18, 256  ;;  %p2227_p6 = scmp.lt.s32.totalorder %s20_s18, %s20_s18 }
  0x10   :  { %p2223_p5 = scmp.ne.s32.totalorder %s20_s18, %s2222_s24  ;;  %p2228_p7 = scmp.lt.s32.totalorder %s2222_s24, %s2222_s24 }
  0x12   :  { %p2229_p8 = por %p2228_p7, %p2227_p6 }
  0x14   :  { %p2230_p9 = pnand %p2229_p8, %p2223_p5 }
  0x16   :  { %2233 = shalt.err (!%p2230_p9)
}
  0x17   :  { %25 = dma.hbm_to_vmem [thread:$0]  %s2579_s0, 256, %s20_s18, [#allocation3], %s2304_s20, %s2304_s20, %s2305_s21  }
  0x18   :  { %s2306_s27 = smov [#allocation7]  }
  0x19   :  { %s44_s28 = sshll.u32 %s2306_s27, 4  ;;  %s45_s28 = int_to_ptr.vmem [resolvable:$true] %s44_s28 }
  0x1a   :  { %s2242_s29 = scalar_lea.vmem %s45_s28, 128  ;;  %p2247_p11 = scmp.lt.s32.totalorder %s45_s28, %s45_s28 }
  0x1b   :  { %p2243_p10 = scmp.ne.s32.totalorder %s45_s28, %s2242_s29  ;;  %p2248_p12 = scmp.lt.s32.totalorder %s2242_s29, %s2242_s29 }
  0x1d   :  { %p2249_p13 = por %p2248_p12, %p2247_p11 }
  0x1f   :  { %p2250_p0 = pnand %p2249_p13, %p2243_p10 }
  0x21   :  { %2253 = shalt.err (!%p2250_p0)
}
  0x22   :  { %47 = dma.hbm_to_vmem [thread:$0]  %s2581_s2, 128, %s45_s28, [#allocation6]  }
  0x23   :  { %2294 = dma.done.wait [#allocation3], 256  }
  0x24   :  { %2295 = vsyncadd [#allocation3], 4294967040 }
  0x25   :  { %2296 = dma.done.wait [#allocation6], 2688  }
  0x26   :  { %2297 = vsyncadd [#allocation6], 4294964608  ;;  %vm84_vm0 = vcmask 261120   ;;  %v62_v0 = vld [vmem:[#allocation5 + $0x18] sm:$0xff]  ;;  %v61_v1 = vld [vmem:[#allocation5 + $0x10] sm:$0xff]  ;;  %v2307_v6 = vmov 0.0   ;;  %v80_v7 = vlaneseq }
  0x27   :  { %2000 = vmatprep.subr.mxu1 %v62_v0  ;;  %v2364_v2 = vld [vmem:[#allocation2] sm:$0xff]  ;;  %v60_v3 = vld [vmem:[#allocation5 + $0x8] sm:$0xff]  ;;  %v59_v4 = vld [vmem:[#allocation5] sm:$0xff]  ;;  %2021 = vmatprep.subr.mxu0 %v2307_v6  ;;  %vm2308_vm1 = vmmov 0   ;;  %s2309_s0 = smov 96   ;;  %vm171_vm2 = vcmask 64512  }
  0x28   :  { %2001 = vmatpush3.msra.mxu1 %v62_v0  ;;  %2008 = vmatprep.mubr.msk.f32.mxu1 %vm84_vm0, %v2364_v2  ;;  %v2368_v5 = vld [vmem:[#allocation2 + $0x8] sm:$0xff]  ;;  %v2374_v8 = vshrl.u32 %v80_v7, 7  ;;  %v2381_v10 = vld [vmem:[#allocation7] sm:$0xff]  ;;  %s2310_s2 = smov 64   ;;  %s2311_s5 = smov 88   ;;  %vm1530_vm3 = vcmask 195584  }
  0x29   :  { %2002 = vmatprep.subr.mxu1 %v61_v1  ;;  %2023 = vmatprep.mubr.msk.f32.mxu0 %vm2308_vm1, %v2307_v6  ;;  %s2312_s6 = smov 120   ;;  %s2313_s7 = smov 56   ;;  %vm1527_vm4 = vcmask 130048   ;;  %vm1750_vm5 = vcmask 523264  }
  0x2a   :  { %2003 = vmatpush3.msra.mxu1 %v61_v1  ;;  %v82_v9 = vsub.s32 0, %v2374_v8  ;;  %s2314_s8 = smov 80   ;;  %s2315_s9 = smov 112  }
  0x2b   :  { %2004 = vmatprep.subr.mxu1 %v60_v3  ;;  %s2316_s10 = smov 48   ;;  %s2317_s11 = smov 72  }
  0x2c   :  { %2005 = vmatpush3.msra.mxu1 %v60_v3  ;;  %v83_v12 = vrot.slane %v2381_v10, %v82_v9  ;;  %s2318_s12 = smov 104   ;;  %s2319_s13 = smov 40  }
  0x2d   :  { %2006 = vmatprep.subr.mxu1 %v59_v4  ;;  %s2320_s14 = smov 16   ;;  %s2321_s15 = smov 24  }
  0x2e   :  { %2007 = vmatpush3.msra.mxu1 %v59_v4  ;;  %s2322_s16 = smov [#allocation9]  }
  0x2f   :  { %2009 = vmatmul.mubr.msk.f32.vlgmr.msra.gmra.mxu1 %vm84_vm0, %v2368_v5  ;;  %2011 = vmatprep.subr.mxu1 %v2307_v6  ;;  %s1891_s17 = sshll.u32 %s2322_s16, 4  ;;  %s1892_s17 = int_to_ptr.vmem [resolvable:$true] %s1891_s17 }
  0x30   :  { %2013 = vmatprep.mubr.msk.f32.mxu1 %vm2308_vm1, %v2307_v6  ;;  %s2254_s18 = scalar_lea.vmem %s1892_s17, 256  ;;  %p2259_p2 = scmp.lt.s32.totalorder %s1892_s17, %s1892_s17 }
  0x31   :  { %p2255_p1 = scmp.ne.s32.totalorder %s1892_s17, %s2254_s18  ;;  %p2260_p3 = scmp.lt.s32.totalorder %s2254_s18, %s2254_s18 }
  0x33   :  { %p2261_p4 = por %p2260_p3, %p2259_p2 }
  0x35   :  { %p2262_p5 = pnand %p2261_p4, %p2255_p1 }
  0xef   :  { %v2010_v11 = vpop.f32.mrf.mxu1 }
  0xf0   :  { %v2387_v15 = vadd.f32 %v2010_v11, %v83_v12 }
  0xf1   :  { %v157_v13 = vpop.f32.mrf.mxu1 }
  0xf2   :  { %v2384_v14 = vadd.f32 %v157_v13, %v83_v12  ;;  %v2401_v19 = vmul.f32 0.35355338, %v2387_v15 }
  0xf4   :  { %169 = vrot.lane.b32.xlu0 %v2384_v14, %s2309_s0  ;;  %v2393_v17 = vmul.f32 0.35355338, %v2384_v14 }
  0xf8   :  { %248 = vrot.lane.b32.xlu0 %v2387_v15, %s2309_s0 }
 0x166   :  { %v170_v16 = vpop.permute.xlu0 %169 }
 0x167   :  { %2012 = vmatpush3.xpose.msk.msra.mxu1 %vm171_vm2, %v170_v16 }
 0x168   :  { %2016 = vmatprep.subr.mxu1 %v2307_v6 }
 0x16a   :  { %v249_v18 = vpop.permute.xlu0 %248  ;;  %2014 = vmatmul.mubr.msk.f32.vlgmr.msra.gmra.mxu1 %vm171_vm2, %v2393_v17 }
 0x16b   :  { %2017 = vmatpush3.xpose.msk.msra.mxu1 %vm171_vm2, %v249_v18  ;;  %2018 = vmatprep.mubr.msk.f32.mxu1 %vm2308_vm1, %v2307_v6 }
 0x16c   :  { %2026 = vmatprep.subr.mxu1 %v2307_v6 }
 0x16e   :  { %2019 = vmatmul.mubr.msk.f32.vlgmr.msra.gmra.mxu1 %vm171_vm2, %v2401_v19 }
 0x16f   :  { %2028 = vmatprep.mubr.msk.f32.mxu1 %vm2308_vm1, %v2307_v6 }
 0x22a   :  { %v243_v20 = vpop.f32.mrf.mxu1 }
 0x22b   :  { %v325_v21 = vsel %vm171_vm2, %v243_v20, -inf }
 0x22c   :  { %326 = vmax.xlane.f32.xlu1 %v325_v21  ;;  %v2015_v22 = vpop.f32.mrf.mxu1 }
 0x22e   :  { %v321_v23 = vpop.f32.mrf.mxu1 }
 0x22f   :  { %v328_v24 = vsel %vm171_vm2, %v321_v23, -inf }
 0x230   :  { %329 = vmax.xlane.f32.xlu1 %v328_v24  ;;  %v2020_v25 = vpop.f32.mrf.mxu1 }
 0x241   :  { %349 = vrot.lane.b32.xlu1 %v2384_v14, %s2310_s2 }
 0x245   :  { %425 = vrot.lane.b32.xlu1 %v2387_v15, %s2310_s2 }
 0x249   :  { %503 = vrot.lane.b32.xlu1 %v2384_v14, %s2311_s5 }
 0x24d   :  { %581 = vrot.lane.b32.xlu1 %v2387_v15, %s2311_s5 }
 0x2b5   :  { %v327_v26 = vpop.xlane.xlu1 %326 }
 0x2b6   :  { %v331_v27 = vsub.f32 %v243_v20, %v327_v26 }
 0x2b8   :  { %v333_v28 = vmul.f32 1.442695, %v331_v27 }
 0x2b9   :  { %v330_v29 = vpop.xlane.xlu1 %329 }
 0x2ba   :  { %2154 = vpow2.f32 %v333_v28  ;;  %v332_v30 = vsub.f32 %v321_v23, %v330_v29 }
 0x2bc   :  { %v335_v31 = vmul.f32 1.442695, %v332_v30 }
 0x2bd   :  { %v350_v32 = vpop.permute.xlu1 %349 }
 0x2be   :  { %2156 = vpow2.f32 %v335_v31  ;;  %2022 = vmatpush3.msra.mxu0 %v350_v32 }
 0x2bf   :  { %2031 = vmatprep.subr.mxu0 %v2307_v6 }
 0x2c1   :  { %v426_v33 = vpop.permute.xlu1 %425 }
 0x2c2   :  { %2027 = vmatpush3.msra.mxu1 %v426_v33 }
 0x2c3   :  { %2036 = vmatprep.subr.mxu1 %v2307_v6 }
 0x2c5   :  { %v504_v38 = vpop.permute.xlu1 %503 }
 0x2c7   :  { %v2155_v34 = vpop.eup %2154 }
 0x2c8   :  { %v337_v35 = vsel %vm171_vm2, %v2155_v34, 0.0 }
 0x2c9   :  { %338 = vadd.xlane.f32.xlu0 %v337_v35  ;;  %v582_v39 = vpop.permute.xlu1 %581 }
 0x2cb   :  { %v2157_v36 = vpop.eup %2156 }
 0x2cc   :  { %v340_v37 = vsel %vm171_vm2, %v2157_v36, 0.0 }
 0x2cd   :  { %341 = vadd.xlane.f32.xlu1 %v340_v37 }
 0x2de   :  { %579 = vrot.lane.b32.xlu1 %v2401_v19, %s2312_s6 }
 0x2df   :  { %501 = vrot.lane.b32.xlu0 %v2393_v17, %s2312_s6 }
 0x352   :  { %v339_v40 = vpop.xlane.xlu0 %338 }
 0x353   :  { %2158 = vrcp.f32 %v339_v40 }
 0x356   :  { %v342_v41 = vpop.xlane.xlu1 %341  ;;  %v502_v46 = vpop.permute.xlu0 %501 }
 0x357   :  { %2160 = vrcp.f32 %v342_v41 }
 0x35a   :  { %v580_v47 = vpop.permute.xlu1 %579 }
 0x360   :  { %v2159_v42 = vpop.eup %2158 }
 0x361   :  { %v2420_v43 = vmul.f32 %v2159_v42, %v2155_v34 }
 0x363   :  { %2024 = vmatmul.mubr.msk.f32.vlgmr.msra.gmra.mxu0 %vm171_vm2, %v2420_v43 }
 0x364   :  { %v2161_v44 = vpop.eup %2160  ;;  %2032 = vmatpush3.xpose.msk.msra.mxu0 %vm171_vm2, %v504_v38  ;;  %2033 = vmatprep.mubr.msk.f32.mxu0 %vm2308_vm1, %v2307_v6 }
 0x365   :  { %v2427_v45 = vmul.f32 %v2161_v44, %v2157_v36  ;;  %2041 = vmatprep.subr.mxu0 %v2307_v6 }
 0x367   :  { %2029 = vmatmul.mubr.msk.f32.vlgmr.msra.gmra.mxu1 %vm171_vm2, %v2427_v45  ;;  %2034 = vmatmul.mubr.msk.f32.vlgmr.msra.gmra.mxu0 %vm171_vm2, %v502_v46 }
 0x368   :  { %2037 = vmatpush3.xpose.msk.msra.mxu1 %vm171_vm2, %v582_v39  ;;  %2038 = vmatprep.mubr.msk.f32.mxu1 %vm2308_vm1, %v2307_v6 }
 0x369   :  { %2046 = vmatprep.subr.mxu1 %v2307_v6  ;;  %2043 = vmatprep.mubr.msk.f32.mxu0 %vm2308_vm1, %v2307_v6 }
 0x36b   :  { %2039 = vmatmul.mubr.msk.f32.vlgmr.msra.gmra.mxu1 %vm171_vm2, %v580_v47 }
 0x36c   :  { %2048 = vmatprep.mubr.msk.f32.mxu1 %vm2308_vm1, %v2307_v6 }
 0x423   :  { %v2442_v48 = vpop.f32.mrf.mxu0 }
 0x425   :  { %v2025_v49 = vpop.f32.mrf.mxu0 }
 0x427   :  { %v2444_v50 = vpop.f32.mrf.mxu1  ;;  %v575_v51 = vpop.f32.mrf.mxu0 }
 0x428   :  { %v657_v52 = vsel %vm171_vm2, %v575_v51, -inf }
 0x429   :  { %658 = vmax.xlane.f32.xlu1 %v657_v52  ;;  %v2030_v53 = vpop.f32.mrf.mxu1  ;;  %v2035_v54 = vpop.f32.mrf.mxu0 }
 0x42b   :  { %v653_v55 = vpop.f32.mrf.mxu1 }
 0x42c   :  { %v660_v56 = vsel %vm171_vm2, %v653_v55, -inf }
 0x42d   :  { %661 = vmax.xlane.f32.xlu0 %v660_v56  ;;  %v2040_v57 = vpop.f32.mrf.mxu1 }
 0x43a   :  { %681 = vrot.lane.b32.xlu1 %v2384_v14, %s2313_s7 }
 0x43e   :  { %835 = vrot.lane.b32.xlu1 %v2384_v14, %s2314_s8 }
 0x442   :  { %913 = vrot.lane.b32.xlu1 %v2387_v15, %s2314_s8 }
 0x443   :  { %757 = vrot.lane.b32.xlu0 %v2387_v15, %s2313_s7 }
 0x447   :  { %833 = vrot.lane.b32.xlu0 %v2393_v17, %s2315_s9 }
 0x4b2   :  { %v659_v58 = vpop.xlane.xlu1 %658 }
 0x4b3   :  { %v663_v59 = vsub.f32 %v575_v51, %v659_v58 }
 0x4b5   :  { %v665_v60 = vmul.f32 1.442695, %v663_v59 }
 0x4b6   :  { %v682_v61 = vpop.permute.xlu1 %681  ;;  %v662_v62 = vpop.xlane.xlu0 %661 }
 0x4b7   :  { %2162 = vpow2.f32 %v665_v60  ;;  %v664_v63 = vsub.f32 %v653_v55, %v662_v62  ;;  %2042 = vmatpush3.msra.mxu0 %v682_v61 }
 0x4b8   :  { %2051 = vmatprep.subr.mxu0 %v2307_v6 }
 0x4b9   :  { %v667_v0 = vmul.f32 1.442695, %v664_v63 }
 0x4ba   :  { %v758_v1 = vpop.permute.xlu0 %757  ;;  %v836_v11 = vpop.permute.xlu1 %835 }
 0x4bb   :  { %2164 = vpow2.f32 %v667_v0  ;;  %2047 = vmatpush3.msra.mxu1 %v758_v1 }
 0x4bc   :  { %2056 = vmatprep.subr.mxu1 %v2307_v6 }
 0x4be   :  { %v914_v12 = vpop.permute.xlu1 %913  ;;  %v834_v23 = vpop.permute.xlu0 %833 }
 0x4c4   :  { %v2163_v3 = vpop.eup %2162 }
 0x4c5   :  { %v669_v4 = vsel %vm171_vm2, %v2163_v3, 0.0 }
 0x4c6   :  { %670 = vadd.xlane.f32.xlu1 %v669_v4 }
 0x4c8   :  { %v2165_v7 = vpop.eup %2164 }
 0x4c9   :  { %v672_v9 = vsel %vm171_vm2, %v2165_v7, 0.0 }
 0x4ca   :  { %673 = vadd.xlane.f32.xlu1 %v672_v9 }
 0x4db   :  { %911 = vrot.lane.b32.xlu1 %v2401_v19, %s2315_s9 }
 0x54f   :  { %v671_v13 = vpop.xlane.xlu1 %670 }
 0x550   :  { %2166 = vrcp.f32 %v671_v13 }
 0x553   :  { %v674_v16 = vpop.xlane.xlu1 %673 }
 0x554   :  { %2168 = vrcp.f32 %v674_v16 }
 0x557   :  { %v912_v24 = vpop.permute.xlu1 %911 }
 0x55d   :  { %v2167_v18 = vpop.eup %2166 }
 0x55e   :  { %v2458_v20 = vmul.f32 %v2167_v18, %v2163_v3 }
 0x560   :  { %2044 = vmatmul.mubr.msk.f32.vlgmr.msra.gmra.mxu0 %vm171_vm2, %v2458_v20  ;;  %v679_v55 = vadd.f32 %v2458_v20, %v2420_v43 }
 0x561   :  { %v2169_v21 = vpop.eup %2168  ;;  %2052 = vmatpush3.xpose.msk.msra.mxu0 %vm171_vm2, %v836_v11  ;;  %2053 = vmatprep.mubr.msk.f32.mxu0 %vm2308_vm1, %v2307_v6 }
 0x562   :  { %v2465_v22 = vmul.f32 %v2169_v21, %v2165_v7  ;;  %2061 = vmatprep.subr.mxu0 %v2307_v6 }
 0x564   :  { %2049 = vmatmul.mubr.msk.f32.vlgmr.msra.gmra.mxu1 %vm171_vm2, %v2465_v22  ;;  %2054 = vmatmul.mubr.msk.f32.vlgmr.msra.gmra.mxu0 %vm171_vm2, %v834_v23  ;;  %v680_v59 = vadd.f32 %v2465_v22, %v2427_v45 }
 0x565   :  { %2057 = vmatpush3.xpose.msk.msra.mxu1 %vm171_vm2, %v914_v12  ;;  %2058 = vmatprep.mubr.msk.f32.mxu1 %vm2308_vm1, %v2307_v6 }
 0x566   :  { %2066 = vmatprep.subr.mxu1 %v2307_v6  ;;  %2063 = vmatprep.mubr.msk.f32.mxu0 %vm2308_vm1, %v2307_v6 }
 0x568   :  { %2059 = vmatmul.mubr.msk.f32.vlgmr.msra.gmra.mxu1 %vm171_vm2, %v912_v24 }
 0x569   :  { %2068 = vmatprep.mubr.msk.f32.mxu1 %vm2308_vm1, %v2307_v6 }
 0x620   :  { %v2480_v25 = vpop.f32.mrf.mxu0 }
 0x622   :  { %v2045_v26 = vpop.f32.mrf.mxu0 }
 0x624   :  { %v2482_v27 = vpop.f32.mrf.mxu1  ;;  %v907_v28 = vpop.f32.mrf.mxu0 }
 0x625   :  { %v989_v29 = vsel %vm171_vm2, %v907_v28, -inf }
 0x626   :  { %990 = vmax.xlane.f32.xlu0 %v989_v29  ;;  %v2050_v30 = vpop.f32.mrf.mxu1  ;;  %v2055_v31 = vpop.f32.mrf.mxu0 }
 0x628   :  { %v985_v32 = vpop.f32.mrf.mxu1 }
 0x629   :  { %v992_v33 = vsel %vm171_vm2, %v985_v32, -inf }
 0x62a   :  { %993 = vmax.xlane.f32.xlu1 %v992_v33  ;;  %v2060_v34 = vpop.f32.mrf.mxu1 }
 0x63b   :  { %1013 = vrot.lane.b32.xlu1 %v2384_v14, %s2316_s10 }
 0x63c   :  { %1089 = vrot.lane.b32.xlu0 %v2387_v15, %s2316_s10 }
 0x63f   :  { %1167 = vrot.lane.b32.xlu1 %v2384_v14, %s2317_s11 }
 0x643   :  { %1245 = vrot.lane.b32.xlu1 %v2387_v15, %s2317_s11 }
 0x647   :  { %1243 = vrot.lane.b32.xlu1 %v2401_v19, %s2318_s12 }
 0x6af   :  { %v991_v35 = vpop.xlane.xlu0 %990 }
 0x6b0   :  { %v995_v36 = vsub.f32 %v907_v28, %v991_v35  ;;  %v66_v35 = vld [vmem:[#allocation5 + $0x38] sm:$0xff] }
 0x6b2   :  { %v997_v37 = vmul.f32 1.442695, %v995_v36  ;;  %v65_v36 = vld [vmem:[#allocation5 + $0x30] sm:$0xff] }
 0x6b3   :  { %v1090_v38 = vpop.permute.xlu0 %1089  ;;  %v994_v39 = vpop.xlane.xlu1 %993 }
 0x6b4   :  { %2170 = vpow2.f32 %v997_v37  ;;  %v996_v40 = vsub.f32 %v985_v32, %v994_v39  ;;  %2067 = vmatpush3.msra.mxu1 %v1090_v38  ;;  %v64_v37 = vld [vmem:[#allocation5 + $0x28] sm:$0xff]  ;;  %v63_v38 = vld [vmem:[#allocation5 + $0x20] sm:$0xff] }
 0x6b5   :  { %2076 = vmatprep.subr.mxu1 %v2307_v6 }
 0x6b6   :  { %v999_v41 = vmul.f32 1.442695, %v996_v40 }
 0x6b7   :  { %v1014_v42 = vpop.permute.xlu1 %1013 }
 0x6b8   :  { %2172 = vpow2.f32 %v999_v41  ;;  %2062 = vmatpush3.msra.mxu0 %v1014_v42 }
 0x6b9   :  { %2071 = vmatprep.subr.mxu0 %v2307_v6 }
 0x6bb   :  { %v1168_v52 = vpop.permute.xlu1 %1167 }
 0x6bf   :  { %v1246_v58 = vpop.permute.xlu1 %1245 }
 0x6c1   :  { %v2171_v44 = vpop.eup %2170 }
 0x6c2   :  { %v1001_v46 = vsel %vm171_vm2, %v2171_v44, 0.0 }
 0x6c3   :  { %1002 = vadd.xlane.f32.xlu0 %v1001_v46  ;;  %v1244_v61 = vpop.permute.xlu1 %1243 }
 0x6c5   :  { %v2173_v19 = vpop.eup %2172 }
 0x6c6   :  { %v1004_v47 = vsel %vm171_vm2, %v2173_v19, 0.0 }
 0x6c7   :  { %1005 = vadd.xlane.f32.xlu0 %v1004_v47 }
 0x6dd   :  { %1165 = vrot.lane.b32.xlu0 %v2393_v17, %s2318_s12 }
 0x74c   :  { %v1003_v49 = vpop.xlane.xlu0 %1002 }
 0x74d   :  { %2174 = vrcp.f32 %v1003_v49 }
 0x750   :  { %v1006_v51 = vpop.xlane.xlu0 %1005 }
 0x751   :  { %2176 = vrcp.f32 %v1006_v51 }
 0x754   :  { %v1166_v60 = vpop.permute.xlu0 %1165 }
 0x75a   :  { %v2175_v53 = vpop.eup %2174 }
 0x75b   :  { %v1009_v54 = vmul.f32 %v2175_v53, %v2171_v44 }
 0x75d   :  { %2064 = vmatmul.mubr.msk.f32.vlgmr.msra.gmra.mxu0 %vm171_vm2, %v1009_v54  ;;  %v2499_v56 = vadd.f32 %v1009_v54, %v679_v55 }
 0x75e   :  { %v2177_v57 = vpop.eup %2176  ;;  %2072 = vmatpush3.xpose.msk.msra.mxu0 %vm171_vm2, %v1168_v52  ;;  %2073 = vmatprep.mubr.msk.f32.mxu0 %vm2308_vm1, %v2307_v6 }
 0x75f   :  { %v1010_v17 = vmul.f32 %v2177_v57, %v2173_v19  ;;  %2081 = vmatprep.subr.mxu0 %v2307_v6 }
 0x761   :  { %2069 = vmatmul.mubr.msk.f32.vlgmr.msra.gmra.mxu1 %vm171_vm2, %v1010_v17  ;;  %2074 = vmatmul.mubr.msk.f32.vlgmr.msra.gmra.mxu0 %vm171_vm2, %v1166_v60  ;;  %v1012_v43 = vadd.f32 %v1010_v17, %v680_v59 }
 0x762   :  { %2077 = vmatpush3.xpose.msk.msra.mxu1 %vm171_vm2, %v1246_v58  ;;  %2078 = vmatprep.mubr.msk.f32.mxu1 %vm2308_vm1, %v2307_v6  ;;  %v1535_v58 = vsub.s32 1, %v2374_v8 }
 0x763   :  { %2086 = vmatprep.subr.mxu1 %v2307_v6  ;;  %2083 = vmatprep.mubr.msk.f32.mxu0 %vm2308_vm1, %v2307_v6 }
 0x764   :  { %v1536_v17 = vrot.slane %v2381_v10, %v1535_v58 }
 0x765   :  { %2079 = vmatmul.mubr.msk.f32.vlgmr.msra.gmra.mxu1 %vm171_vm2, %v1244_v61 }
 0x766   :  { %2088 = vmatprep.mubr.msk.f32.mxu1 %vm2308_vm1, %v2307_v6 }
 0x81d   :  { %v1085_v45 = vpop.f32.mrf.mxu0 }
 0x81f   :  { %v2065_v62 = vpop.f32.mrf.mxu0 }
 0x821   :  { %v1161_v63 = vpop.f32.mrf.mxu1  ;;  %v1239_v0 = vpop.f32.mrf.mxu0 }
 0x822   :  { %v1321_v1 = vsel %vm171_vm2, %v1239_v0, -inf }
 0x823   :  { %1322 = vmax.xlane.f32.xlu0 %v1321_v1  ;;  %v2070_v3 = vpop.f32.mrf.mxu1  ;;  %v2075_v4 = vpop.f32.mrf.mxu0 }
 0x825   :  { %v1317_v7 = vpop.f32.mrf.mxu1 }
 0x826   :  { %v1324_v9 = vsel %vm171_vm2, %v1317_v7, -inf }
 0x827   :  { %1325 = vmax.xlane.f32.xlu1 %v1324_v9  ;;  %v2080_v11 = vpop.f32.mrf.mxu1 }
 0x838   :  { %1345 = vrot.lane.b32.xlu1 %v2384_v14, %s2319_s13 }
 0x83c   :  { %1503 = vrot.lane.b32.xlu1 %v2480_v25, %s2305_s21 }
 0x840   :  { %1505 = vrot.lane.b32.xlu1 %v2482_v27, %s2305_s21 }
 0x844   :  { %1513 = vrot.lane.b32.xlu1 %v1161_v63, %s2320_s14 }
 0x8ac   :  { %v1323_v6 = vpop.xlane.xlu0 %1322 }
 0x8ad   :  { %v1327_v12 = vsub.f32 %v1239_v0, %v1323_v6 }
 0x8af   :  { %v1329_v13 = vmul.f32 1.442695, %v1327_v12  ;;  %v70_v12 = vld [vmem:[#allocation5 + $0x58] sm:$0xff] }
 0x8b0   :  { %v1326_v16 = vpop.xlane.xlu1 %1325 }
 0x8b1   :  { %2178 = vpow2.f32 %v1329_v13  ;;  %v1328_v18 = vsub.f32 %v1317_v7, %v1326_v16  ;;  %v68_v13 = vld [vmem:[#allocation5 + $0x48] sm:$0xff]  ;;  %v67_v16 = vld [vmem:[#allocation5 + $0x40] sm:$0xff] }
 0x8b3   :  { %v1331_v20 = vmul.f32 1.442695, %v1328_v18  ;;  %v78_v18 = vld [vmem:[#allocation5 + $0x98] sm:$0xff] }
 0x8b4   :  { %v1346_v21 = vpop.permute.xlu1 %1345 }
 0x8b5   :  { %2180 = vpow2.f32 %v1331_v20  ;;  %2082 = vmatpush3.msra.mxu0 %v1346_v21  ;;  %v77_v20 = vld [vmem:[#allocation5 + $0x90] sm:$0xff]  ;;  %v76_v21 = vld [vmem:[#allocation5 + $0x88] sm:$0xff] }
 0x8b6   :  { %2091 = vmatprep.subr.mxu0 %v66_v35 }
 0x8b8   :  { %v1504_v44 = vpop.permute.xlu1 %1503 }
 0x8b9   :  { %v1525_v47 = vsel %vm171_vm2, %v2442_v48, %v1504_v44  ;;  %v1661_v44 = vsub.s32 2, %v2374_v8 }
 0x8bc   :  { %v1506_v46 = vpop.permute.xlu1 %1505 }
 0x8bd   :  { %v1526_v54 = vsel %vm171_vm2, %v2444_v50, %v1506_v46  ;;  %v1662_v46 = vrot.slane %v2381_v10, %v1661_v44 }
 0x8be   :  { %v2179_v22 = vpop.eup %2178 }
 0x8bf   :  { %v1333_v14 = vsel %vm171_vm2, %v2179_v22, 0.0 }
 0x8c0   :  { %1334 = vadd.xlane.f32.xlu0 %v1333_v14  ;;  %v1514_v49 = vpop.permute.xlu1 %1513 }
 0x8c1   :  { %v1529_v55 = vsel %vm1527_vm4, %v1526_v54, %v1514_v49  ;;  %v1748_v54 = vsub.s32 3, %v2374_v8 }
 0x8c2   :  { %v2181_v23 = vpop.eup %2180 }
 0x8c3   :  { %v1336_v24 = vsel %vm171_vm2, %v2181_v23, 0.0 }
 0x8c4   :  { %1337 = vadd.xlane.f32.xlu0 %v1336_v24 }
 0x8da   :  { %1421 = vrot.lane.b32.xlu0 %v2387_v15, %s2319_s13 }
 0x8de   :  { %1511 = vrot.lane.b32.xlu0 %v1085_v45, %s2320_s14 }
 0x949   :  { %v1335_v25 = vpop.xlane.xlu0 %1334 }
 0x94a   :  { %2182 = vrcp.f32 %v1335_v25 }
 0x94d   :  { %v1338_v26 = vpop.xlane.xlu0 %1337 }
 0x94e   :  { %2184 = vrcp.f32 %v1338_v26 }
 0x951   :  { %v1422_v27 = vpop.permute.xlu0 %1421 }
 0x952   :  { %2087 = vmatpush3.msra.mxu1 %v1422_v27 }
 0x953   :  { %2102 = vmatprep.subr.mxu1 %v70_v12 }
 0x955   :  { %v1512_v19 = vpop.permute.xlu0 %1511 }
 0x956   :  { %v1528_v51 = vsel %vm1527_vm4, %v1525_v47, %v1512_v19 }
 0x957   :  { %v2183_v28 = vpop.eup %2182 }
 0x958   :  { %v1341_v29 = vmul.f32 %v2183_v28, %v2179_v22  ;;  %v75_v22 = vld [vmem:[#allocation5 + $0x80] sm:$0xff]  ;;  %v1649_v28 = vsub.s32 4, %v2374_v8 }
 0x95a   :  { %2084 = vmatmul.mubr.msk.f32.vlgmr.msra.gmra.mxu0 %vm171_vm2, %v1341_v29  ;;  %v1343_v30 = vadd.f32 %v1341_v29, %v2499_v56  ;;  %v1655_v29 = vsub.s32 5, %v2374_v8 }
 0x95b   :  { %v2185_v31 = vpop.eup %2184  ;;  %2092 = vmatpush3.msra.mxu0 %v66_v35 }
 0x95c   :  { %v1342_v32 = vmul.f32 %v2185_v31, %v2181_v23  ;;  %v1497_v33 = vmul.f32 0.25, %v1343_v30  ;;  %2093 = vmatprep.subr.mxu0 %v65_v36  ;;  %v1650_v30 = vrot.slane %v2381_v10, %v1649_v28 }
 0x95d   :  { %2094 = vmatpush3.msra.mxu0 %v65_v36 }
 0x95e   :  { %2089 = vmatmul.mubr.msk.f32.vlgmr.msra.gmra.mxu1 %vm171_vm2, %v1342_v32  ;;  %v1344_v34 = vadd.f32 %v1342_v32, %v1012_v43  ;;  %1499 = vst.msk [vmem:[#allocation9] sm:$0xff] %vm171_vm2, %v1497_v33  ;;  %2095 = vmatprep.subr.mxu0 %v64_v37  ;;  %v1656_v33 = vrot.slane %v2381_v10, %v1655_v29 }
 0x95f   :  { %2096 = vmatpush3.msra.mxu0 %v64_v37  ;;  %2103 = vmatpush3.msra.mxu1 %v70_v12 }
 0x960   :  { %v1498_v15 = vmul.f32 0.25, %v1344_v34  ;;  %2097 = vmatprep.subr.mxu0 %v63_v38 }
 0x961   :  { %2098 = vmatpush3.msra.mxu0 %v63_v38 }
 0x962   :  { %1500 = vst.msk [vmem:[#allocation9 + $0x8] sm:$0xff] %vm171_vm2, %v1498_v15  ;;  %2113 = vmatprep.subr.mxu0 %v78_v18 }
 0xa1a   :  { %v1417_v39 = vpop.f32.mrf.mxu0 }
 0xa1b   :  { %1519 = vrot.lane.b32.xlu0 %v1417_v39, %s2321_s15  ;;  %v74_v39 = vld [vmem:[#allocation5 + $0x78] sm:$0xff] }
 0xa1c   :  { %v2085_v40 = vpop.f32.mrf.mxu0 }
 0xa1d   :  { %v73_v40 = vld [vmem:[#allocation5 + $0x70] sm:$0xff] }
 0xa1e   :  { %v1493_v41 = vpop.f32.mrf.mxu1 }
 0xa1f   :  { %1521 = vrot.lane.b32.xlu1 %v1493_v41, %s2321_s15  ;;  %v72_v41 = vld [vmem:[#allocation5 + $0x68] sm:$0xff] }
 0xa20   :  { %v2090_v42 = vpop.f32.mrf.mxu1 }
 0xa21   :  { %v71_v42 = vld [vmem:[#allocation5 + $0x60] sm:$0xff] }
 0xa8d   :  { %v1520_v52 = vpop.permute.xlu0 %1519 }
 0xa8e   :  { %v1531_v53 = vsel %vm1530_vm3, %v1528_v51, %v1520_v52 }
 0xa8f   :  { %2099 = vmatprep.mubr.msk.f32.mxu0 %vm84_vm0, %v1531_v53 }
 0xa91   :  { %v1522_v56 = vpop.permute.xlu1 %1521 }
 0xa92   :  { %v1532_v57 = vsel %vm1530_vm3, %v1529_v55, %v1522_v56  ;;  %v1749_v55 = vrot.slane %v2381_v10, %v1748_v54 }
 0xa93   :  { %2100 = vmatmul.mubr.msk.f32.vlgmr.msra.gmra.mxu0 %vm84_vm0, %v1532_v57 }
 0xa94   :  { %2114 = vmatpush3.msra.mxu0 %v78_v18 }
 0xa95   :  { %2115 = vmatprep.subr.mxu0 %v77_v20 }
 0xa96   :  { %2116 = vmatpush3.msra.mxu0 %v77_v20 }
 0xa97   :  { %2117 = vmatprep.subr.mxu0 %v76_v21 }
 0xa98   :  { %2118 = vmatpush3.msra.mxu0 %v76_v21 }
 0xa99   :  { %2119 = vmatprep.subr.mxu0 %v75_v22 }
 0xa9a   :  { %2120 = vmatpush3.msra.mxu0 %v75_v22 }
 0xa9b   :  { %2121 = vmatprep.subr.mxu0 %v74_v39 }
 0xa9c   :  { %2122 = vmatpush3.msra.mxu0 %v74_v39 }
 0xa9d   :  { %2123 = vmatprep.subr.mxu0 %v73_v40 }
 0xa9e   :  { %2124 = vmatpush3.msra.mxu0 %v73_v40 }
 0xa9f   :  { %2125 = vmatprep.subr.mxu0 %v72_v41 }
 0xaa0   :  { %2126 = vmatpush3.msra.mxu0 %v72_v41 }
 0xaa1   :  { %2127 = vmatprep.subr.mxu0 %v71_v42 }
 0xaa2   :  { %2128 = vmatpush3.msra.mxu0 %v71_v42 }
 0xb53   :  { %v2101_v48 = vpop.f32.mrf.mxu0 }
 0xb54   :  { %v1615_v59 = vadd.f32 %v2101_v48, %v1536_v17 }
 0xb55   :  { %v1609_v60 = vpop.f32.mrf.mxu0 }
 0xb56   :  { %v1610_v43 = vadd.f32 %v1609_v60, %v1536_v17  ;;  %v1619_v61 = vadd.f32 %v1615_v59, %v2368_v5 }
 0xb58   :  { %v1623_v45 = vsel %vm84_vm0, %v1619_v61, 0.0  ;;  %v1618_v62 = vadd.f32 %v1610_v43, %v2364_v2  ;;  %v69_v2 = vld [vmem:[#allocation5 + $0x50] sm:$0xff] }
 0xb59   :  { %1624 = vadd.xlane.f32.xlu1 %v1623_v45  ;;  %2104 = vmatprep.subr.mxu1 %v69_v2 }
 0xb5a   :  { %v1620_v50 = vsel %vm84_vm0, %v1618_v62, 0.0  ;;  %2105 = vmatpush3.msra.mxu1 %v69_v2 }
 0xb5b   :  { %1621 = vadd.xlane.f32.xlu0 %v1620_v50  ;;  %2106 = vmatprep.subr.mxu1 %v68_v13 }
 0xb5c   :  { %2107 = vmatpush3.msra.mxu1 %v68_v13 }
 0xb5d   :  { %2108 = vmatprep.subr.mxu1 %v67_v16 }
 0xb5e   :  { %2109 = vmatpush3.msra.mxu1 %v67_v16 }
 0xbe2   :  { %v1625_v63 = vpop.xlane.xlu1 %1624 }
 0xbe3   :  { %v1628_v0 = vmul.f32 0.03125, %v1625_v63 }
 0xbe4   :  { %v1622_v1 = vpop.xlane.xlu0 %1621 }
 0xbe5   :  { %v1627_v3 = vmul.f32 0.03125, %v1622_v1  ;;  %v1630_v4 = vsub.f32 %v1619_v61, %v1628_v0 }
 0xbe7   :  { %v1629_v7 = vsub.f32 %v1618_v62, %v1627_v3  ;;  %v1632_v6 = vmul.f32 %v1630_v4, %v1630_v4 }
 0xbe9   :  { %v1631_v9 = vmul.f32 %v1629_v7, %v1629_v7  ;;  %v1636_v5 = vsel %vm84_vm0, %v1632_v6, 0.0 }
 0xbeb   :  { %v1633_v11 = vsel %vm84_vm0, %v1631_v9, 0.0 }
 0xbec   :  { %1634 = vadd.xlane.f32.xlu0 %v1633_v11 }
 0xbf0   :  { %1637 = vadd.xlane.f32.xlu0 %v1636_v5 }
 0xc75   :  { %v1635_v14 = vpop.xlane.xlu0 %1634 }
 0xc76   :  { %v1639_v23 = vmul.f32 0.03125, %v1635_v14 }
 0xc78   :  { %v1641_v24 = vadd.f32 1e-05, %v1639_v23 }
 0xc79   :  { %v1638_v25 = vpop.xlane.xlu0 %1637 }
 0xc7a   :  { %2186 = vrsqrt.f32 %v1641_v24  ;;  %v1640_v26 = vmul.f32 0.03125, %v1638_v25 }
 0xc7c   :  { %v1642_v27 = vadd.f32 1e-05, %v1640_v26 }
 0xc7e   :  { %2188 = vrsqrt.f32 %v1642_v27 }
 0xc87   :  { %v2187_v31 = vpop.eup %2186 }
 0xc88   :  { %v1645_v32 = vmul.f32 %v2187_v31, %v1629_v7 }
 0xc8a   :  { %v1651_v34 = vmul.f32 %v1650_v30, %v1645_v32 }
 0xc8b   :  { %v2189_v15 = vpop.eup %2188 }
 0xc8c   :  { %v1646_v35 = vmul.f32 %v2189_v15, %v1630_v4  ;;  %v1657_v36 = vadd.f32 %v1656_v33, %v1651_v34 }
 0xc8e   :  { %v1652_v37 = vmul.f32 %v1650_v30, %v1646_v35  ;;  %2110 = vmatprep.mubr.msk.f32.mxu1 %vm84_vm0, %v1657_v36 }
 0xc90   :  { %v1658_v38 = vadd.f32 %v1656_v33, %v1652_v37 }
 0xc92   :  { %2111 = vmatmul.mubr.msk.f32.vlgmr.msra.gmra.mxu1 %vm84_vm0, %v1658_v38 }
 0xd52   :  { %v2112_v19 = vpop.f32.mrf.mxu1 }
 0xd53   :  { %v1741_v47 = vadd.f32 %v2112_v19, %v1662_v46 }
 0xd54   :  { %v1735_v49 = vpop.f32.mrf.mxu1 }
 0xd55   :  { %v1736_v51 = vadd.f32 %v1735_v49, %v1662_v46  ;;  %v1745_v53 = vmax.f32 %v1741_v47, 0.0 }
 0xd57   :  { %v1744_v52 = vmax.f32 %v1736_v51, 0.0 }
 0xd59   :  { %2129 = vmatprep.mubr.msk.f32.mxu0 %vm1750_vm5, %v1744_v52 }
 0xd5a   :  { %2130 = vmatmul.mubr.msk.f32.vlgmr.msra.gmra.mxu0 %vm1750_vm5, %v1745_v53 }
 0xe1a   :  { %v2131_v56 = vpop.f32.mrf.mxu0 }
 0xe1b   :  { %v1829_v57 = vadd.f32 %v2131_v56, %v1749_v55 }
 0xe1c   :  { %v1823_v58 = vpop.f32.mrf.mxu0 }
 0xe1d   :  { %v1824_v17 = vadd.f32 %v1823_v58, %v1749_v55  ;;  %v1833_v48 = vadd.f32 %v1829_v57, %v1658_v38 }
 0xe1f   :  { %v1837_v59 = vsel %vm84_vm0, %v1833_v48, 0.0  ;;  %v1832_v60 = vadd.f32 %v1824_v17, %v1657_v36 }
 0xe20   :  { %1838 = vadd.xlane.f32.xlu0 %v1837_v59 }
 0xe21   :  { %v1834_v43 = vsel %vm84_vm0, %v1832_v60, 0.0 }
 0xe22   :  { %1835 = vadd.xlane.f32.xlu1 %v1834_v43 }
 0xea9   :  { %v1839_v61 = vpop.xlane.xlu0 %1838 }
 0xeaa   :  { %v1841_v45 = vmul.f32 0.03125, %v1839_v61 }
 0xeab   :  { %v1836_v62 = vpop.xlane.xlu1 %1835 }
 0xeac   :  { %v1843_v50 = vsub.f32 %v1833_v48, %v1841_v45  ;;  %v1840_v63 = vmul.f32 0.03125, %v1836_v62 }
 0xeae   :  { %v1842_v0 = vsub.f32 %v1832_v60, %v1840_v63  ;;  %v1845_v1 = vmul.f32 %v1843_v50, %v1843_v50 }
 0xeb0   :  { %v1849_v3 = vsel %vm84_vm0, %v1845_v1, 0.0  ;;  %v1844_v4 = vmul.f32 %v1842_v0, %v1842_v0 }
 0xeb1   :  { %1850 = vadd.xlane.f32.xlu0 %v1849_v3 }
 0xeb2   :  { %v1846_v7 = vsel %vm84_vm0, %v1844_v4, 0.0 }
 0xeb3   :  { %1847 = vadd.xlane.f32.xlu1 %v1846_v7 }
 0xeb4   :  { %2265 = shalt.err (!%p2262_p5)
}
 0xeb5   :  { %1897 = dma.vmem_to_hbm [thread:$0]  %s1892_s17, 256, %s2583_s4, [#allocation10], %s2304_s20, %s2304_s20, %s2305_s21   ;;  %v1862_v13 = vsub.s32 6, %v2374_v8  ;;  %v1868_v16 = vsub.s32 7, %v2374_v8 }
 0xeb6   :  { %s2323_s4 = smov [#allocation8]  }
 0xeb7   :  { %v1863_v18 = vrot.slane %v2381_v10, %v1862_v13  ;;  %v1869_v22 = vrot.slane %v2381_v10, %v1868_v16  ;;  %s1879_s23 = sshll.u32 %s2323_s4, 4  ;;  %s1880_s23 = int_to_ptr.vmem [resolvable:$true] %s1879_s23 }
 0xeb8   :  { %s2274_s24 = scalar_lea.vmem %s1880_s23, 256  ;;  %p2279_p7 = scmp.lt.s32.totalorder %s1880_s23, %s1880_s23 }
 0xeb9   :  { %p2275_p6 = scmp.ne.s32.totalorder %s1880_s23, %s2274_s24  ;;  %p2280_p8 = scmp.lt.s32.totalorder %s2274_s24, %s2274_s24 }
 0xebb   :  { %p2281_p9 = por %p2280_p8, %p2279_p7 }
 0xebd   :  { %p2282_p10 = pnand %p2281_p9, %p2275_p6 }
 0xf3a   :  { %v1851_v9 = vpop.xlane.xlu0 %1850 }
 0xf3b   :  { %v1853_v11 = vmul.f32 0.03125, %v1851_v9 }
 0xf3c   :  { %v1848_v6 = vpop.xlane.xlu1 %1847 }
 0xf3d   :  { %v1855_v5 = vadd.f32 1e-05, %v1853_v11  ;;  %v1852_v12 = vmul.f32 0.03125, %v1848_v6 }
 0xf3f   :  { %2190 = vrsqrt.f32 %v1855_v5  ;;  %v1854_v2 = vadd.f32 1e-05, %v1852_v12 }
 0xf41   :  { %2192 = vrsqrt.f32 %v1854_v2 }
 0xf4c   :  { %v2191_v20 = vpop.eup %2190 }
 0xf4d   :  { %v1859_v21 = vmul.f32 %v2191_v20, %v1843_v50 }
 0xf4e   :  { %v2193_v14 = vpop.eup %2192 }
 0xf4f   :  { %v1858_v23 = vmul.f32 %v2193_v14, %v1842_v0  ;;  %v1865_v24 = vmul.f32 %v1863_v18, %v1859_v21 }
 0xf51   :  { %v1864_v25 = vmul.f32 %v1863_v18, %v1858_v23  ;;  %v1871_v26 = vadd.f32 %v1869_v22, %v1865_v24 }
 0xf53   :  { %v1870_v27 = vadd.f32 %v1869_v22, %v1864_v25  ;;  %1873 = vst.msk [vmem:[#allocation8 + $0x8] sm:$0xff] %vm84_vm0, %v1871_v26 }
 0xf55   :  { %1872 = vst.msk [vmem:[#allocation8] sm:$0xff] %vm84_vm0, %v1870_v27 }
 0xf56   :  { %2285 = shalt.err (!%p2282_p10)
}
 0xf57   :  { %1885 = dma.vmem_to_hbm [thread:$0]  %s1880_s23, 256, %s2582_s3, [#allocation4], %s2304_s20, %s2304_s20, %s2305_s21  }
 0xf58   :  { %2298 = dma.done.wait [#allocation4], 256  }
 0xf59   :  { %2299 = vsyncadd [#allocation4], 4294967040 }
 0xf5a   :  { %2300 = dma.done.wait [#allocation10], 256  }
 0xf5b   :  { %2301 = vsyncadd [#allocation10], 4294967040 }
 0xf5c   :  { %1904 = vsyncpa [#allocation3], 1 }
 0xf5d   :  { %1905 = vsyncpa [#allocation6], 1 }
 0xf5e   :  { %1906 = vsyncpa [#allocation4], 1 }
 0xf5f   :  { %1907 = vsyncpa [#allocation10], 1 }

</bundles_post_ra>
